<compile_context>
chip_gen: v6e
topology: v6e:2x2x1
jax: 0.10.0
libtpu: 0.0.40
codegen_flags: <defaults>
</compile_context>

<pallas_src>
import functools

import jax
import jax.numpy as jnp
from jax import lax
from jax.experimental import pallas as pl
from jax.experimental.pallas import tpu as pltpu


def _round_up(v, m):
    return ((v + m - 1) // m) * m


# ----------------------------------------------------------------------------
# Fused kernel: preprocessing + CnnHighway + MLP head
# (3 input DMAs, 1 output DMA, single invocation)
# ----------------------------------------------------------------------------
def _cnn_predictor_kernel(act_ref, w_ref, f_ref, out_ref, *,
                          B, S, D, T, Tpad, C, H, K, Lpad,
                          r_conv, r_gh, r_w1, r_w2):
    bf16 = jnp.bfloat16
    BT = B * Tpad
    Fp = act_ref.shape[-1]
    K2 = 2 * K

    xm = act_ref[0]          # (BT, Fp) masked inputs (lanes >= D zero, pad rows zero)
    addend = act_ref[1]      # (BT, Fp) pos embedding (+ special-token row at t == S)

    # ---- masked softmax over the first D feature lanes -----------------------
    lane = lax.broadcasted_iota(jnp.int32, (BT, Fp), 1)
    xm_m = jnp.where(lane < D, xm, -jnp.inf)
    e = jnp.exp(xm_m - jnp.max(xm_m, axis=-1, keepdims=True))
    sm = e * pl.reciprocal(jnp.sum(e, axis=-1, keepdims=True), approx=True)
    # softmax only exists for real sequence rows (t < S); special/pad rows -> 0
    tloc = lax.broadcasted_iota(jnp.int32, (BT, Fp), 0) & (Tpad - 1)
    sm = jnp.where(tloc < S, sm, 0.0)
    # h = [x_masked | softmax | 0-pad] + (pos_emb + special-token row)
    h = xm + pltpu.roll(sm, shift=D, axis=1) + addend                # (BT, Fp) f32

    # ---- fused width-1 / width-2 convolutions: one lane-dense matmul ---------
    # output columns: [c1 (C) | A = h[t]@W2a (C) | Bp = h[t]@W2b (C) | 0 (C)]
    c_all = jnp.dot(h.astype(bf16), w_ref[r_conv:r_conv + Fp, 0:K2],
                    preferred_element_type=jnp.float32) + f_ref[0:1, 0:K2]
    left = c_all[:, 0:K]                       # [c1 | A]
    right = c_all[:, K:K2]                     # [Bp | 0]
    # c2[t] = A[t] + Bp[t+1]: lane-shift Bp under A's columns, sublane-shift +1 row
    comb = left + pltpu.roll(pltpu.roll(right, shift=C, axis=1),
                             shift=BT - 1, axis=0)

    # ---- max over time (width-1 valid t < T, width-2 valid t < T-1), tanh ----
    comb3 = comb.reshape(B, Tpad, K)
    t_idx = lax.broadcasted_iota(jnp.int32, (B, Tpad, K), 1)
    c_idx = lax.broadcasted_iota(jnp.int32, (B, Tpad, K), 2)
    valid = t_idx < jnp.where(c_idx < C, T, T - 1)
    feat = jnp.tanh(jnp.max(jnp.where(valid, comb3, -jnp.inf), axis=1))   # (B, K)

    # ---- highway layer (fused gate + nonlinear projection) -------------------
    gn = jnp.dot(feat.astype(bf16), w_ref[r_gh:r_gh + K, 0:K2],
                 preferred_element_type=jnp.float32) + f_ref[1:2, 0:K2]
    gate = jax.nn.sigmoid(gn[:, 0:K])
    hcnn = gate * feat + (1.0 - gate) * jnp.tanh(gn[:, K:K2])

    # ---- layer norm over the feature dim --------------------------------------
    mu = jnp.mean(hcnn, axis=-1, keepdims=True)
    var = jnp.mean(jnp.square(hcnn - mu), axis=-1, keepdims=True)
    hcnn = (hcnn - mu) * lax.rsqrt(var + 1e-5) * f_ref[3:4, 0:K] + f_ref[3:4, K:K2]

    # ---- MLP head (BatchNorm folded into w1/b1; output padded to Lpad lanes) --
    z = jnp.tanh(jnp.dot(hcnn.astype(bf16), w_ref[r_w1:r_w1 + K, 0:H],
                         preferred_element_type=jnp.float32) + f_ref[2:3, 0:H])
    out_ref[...] = (jnp.dot(z.astype(bf16), w_ref[r_w2:r_w2 + H, 0:Lpad],
                            preferred_element_type=jnp.float32)
                    + f_ref[2:3, H:H + Lpad])


# ----------------------------------------------------------------------------
# Deterministic parameter init (PyTorch-style shapes / default init)
# ----------------------------------------------------------------------------
def init_params(key, input_dim=14, hidden_dim=128, num_layers=1, conv_filters=64,
                num_segments=2, num_labels=3):
    D, C, H, L = input_dim, conv_filters, hidden_dim, num_labels
    F = 2 * D
    K = 2 * C
    ks = jax.random.split(key, 16)

    def uni(k, shape, fan_in):
        b = 1.0 / (fan_in ** 0.5)
        return jax.random.uniform(k, shape, jnp.float32, -b, b)

    p = {}
    sv1 = jax.random.normal(ks[0], (1, D), jnp.float32) / (D ** 0.5)
    sv2 = jax.random.normal(ks[1], (1, D), jnp.float32) + 1.0 / D
    p['special_vec'] = jnp.concatenate([sv1, sv2], axis=-1)                     # (1,F)
    p['pos_emb'] = jax.random.normal(ks[2], (num_segments + 2, F),
                                     jnp.float32) / (D ** 0.5)
    # convs, torch layout (out_ch, in_ch, width)
    p['conv1_w'] = uni(ks[3], (C, F, 1), F);      p['conv1_b'] = uni(ks[4], (C,), F)
    p['conv2_w'] = uni(ks[5], (C, F, 2), 2 * F);  p['conv2_b'] = uni(ks[6], (C,), 2 * F)
    # highway (num_layers = 1), torch Linear layout (out, in)
    p['hw_gate_w'] = uni(ks[7], (K, K), K);  p['hw_gate_b'] = uni(ks[8], (K,), K)
    p['hw_lin_w'] = uni(ks[9], (K, K), K);   p['hw_lin_b'] = uni(ks[10], (K,), K)
    # layer norm
    p['ln_gamma'] = jnp.ones((K,), jnp.float32)
    p['ln_beta'] = jnp.zeros((K,), jnp.float32)
    # MLP: Linear(K,H) -> BatchNorm1d(H) -> tanh -> Linear(H,L)
    p['w1'] = uni(ks[11], (H, K), K);  p['b1'] = uni(ks[12], (H,), K)
    p['bn_gamma'] = jnp.ones((H,), jnp.float32)
    p['bn_beta'] = jnp.zeros((H,), jnp.float32)
    p['bn_mean'] = jnp.zeros((H,), jnp.float32)   # running stats (eval mode)
    p['bn_var'] = jnp.ones((H,), jnp.float32)
    p['w2'] = uni(ks[13], (L, H), H);  p['b2'] = uni(ks[14], (L,), H)
    return p


# ----------------------------------------------------------------------------
# Forward pass: JAX glue (gather / pack / fold) + one fused Pallas call
# ----------------------------------------------------------------------------
@jax.jit
def cnn_predictor_forward(x, mask, params):
    B, S, D = x.shape
    T = S + 1
    Tpad = max(8, 1 << (T - 1).bit_length())       # power-of-2 padded time length
    F = 2 * D
    Fp = _round_up(F, 8)
    C = params['conv1_b'].shape[0]
    K = 2 * C
    K2 = 2 * K
    H = params['b1'].shape[0]
    L = params['b2'].shape[0]
    Lpad = _round_up(L, 128)
    P = params['pos_emb'].shape[0]
    f32, bf16 = jnp.float32, jnp.bfloat16

    # ---- activation slab: plane 0 = masked x, plane 1 = pos emb + special row --
    mask_f = mask.astype(f32)[:, :, None]
    xm = x.astype(f32) * mask_f                                          # (B,S,D)
    plane0 = jnp.zeros((B, Tpad, Fp), f32).at[:, :S, :D].set(xm)

    mask_ext = jnp.concatenate([mask, jnp.ones((B, 1), dtype=mask.dtype)], axis=1)
    # TODO(synk): clip assumes cumsum stays within the (num_segments+2)-row table.
    idx = jnp.clip(jnp.cumsum(mask_ext.astype(jnp.int32), axis=1), 0, P - 1)  # (B,T)
    pos = jnp.take(params['pos_emb'], idx, axis=0)                        # (B,T,F)
    plane1 = jnp.zeros((B, Tpad, Fp), f32).at[:, :T, :F].set(pos)
    plane1 = plane1.at[:, S, :F].add(params['special_vec'][0])
    act = jnp.stack([plane0, plane1], axis=0).reshape(2, B * Tpad, Fp)

    # ---- bf16 weight slab (static, 16-row aligned offsets) ----------------------
    slab_w = max(K2, H, Lpad)
    r_conv = 0
    r_gh = _round_up(r_conv + Fp, 16)
    r_w1 = _round_up(r_gh + K, 16)
    r_w2 = _round_up(r_w1 + K, 16)
    n_rows = _round_up(r_w2 + H, 16)

    wconv = jnp.zeros((Fp, slab_w), f32)
    wconv = wconv.at[:F, 0:C].set(params['conv1_w'][:, :, 0].T)
    wconv = wconv.at[:F, C:2 * C].set(params['conv2_w'][:, :, 0].T)
    wconv = wconv.at[:F, 2 * C:3 * C].set(params['conv2_w'][:, :, 1].T)

    wgh = jnp.zeros((K, slab_w), f32)
    wgh = wgh.at[:, 0:K].set(params['hw_gate_w'].T)
    wgh = wgh.at[:, K:K2].set(params['hw_lin_w'].T)

    bn_scale = params['bn_gamma'] * lax.rsqrt(params['bn_var'] + 1e-5)
    w1f = jnp.zeros((K, slab_w), f32).at[:, 0:H].set(
        (params['w1'] * bn_scale[:, None]).T)
    w2p = jnp.zeros((H, slab_w), f32).at[:, 0:L].set(params['w2'].T)

    wslab = jnp.zeros((n_rows, slab_w), f32)
    wslab = wslab.at[r_conv:r_conv + Fp].set(wconv)
    wslab = wslab.at[r_gh:r_gh + K].set(wgh)
    wslab = wslab.at[r_w1:r_w1 + K].set(w1f)
    wslab = wslab.at[r_w2:r_w2 + H].set(w2p)
    wslab = wslab.astype(bf16)

    # ---- f32 bias / scale slab ---------------------------------------------------
    fw = max(K2, H + Lpad)
    b1f = (params['b1'] - params['bn_mean']) * bn_scale + params['bn_beta']
    fslab = jnp.zeros((4, fw), f32)
    fslab = fslab.at[0, 0:C].set(params['conv1_b'])
    fslab = fslab.at[0, C:2 * C].set(params['conv2_b'])
    fslab = fslab.at[1, 0:K].set(params['hw_gate_b'])
    fslab = fslab.at[1, K:K2].set(params['hw_lin_b'])
    fslab = fslab.at[2, 0:H].set(b1f)
    fslab = fslab.at[2, H:H + L].set(params['b2'])
    fslab = fslab.at[3, 0:K].set(params['ln_gamma'])
    fslab = fslab.at[3, K:K2].set(params['ln_beta'])

    kernel = functools.partial(
        _cnn_predictor_kernel, B=B, S=S, D=D, T=T, Tpad=Tpad, C=C, H=H, K=K,
        Lpad=Lpad, r_conv=r_conv, r_gh=r_gh, r_w1=r_w1, r_w2=r_w2)

    vmem = pl.BlockSpec(memory_space=pltpu.MemorySpace.VMEM)
    out = pl.pallas_call(
        kernel,
        out_shape=jax.ShapeDtypeStruct((B, Lpad), f32),
        in_specs=[vmem, vmem, vmem],
        out_specs=vmem,
    )(act, wslab, fslab)
    return out[:, :L]


if __name__ == "__main__":
    input_dim, hidden_dim, conv_filters = 14, 128, 64
    num_segments, num_labels = 2, 3
    bsz, seq = 2, 8

    key = jax.random.PRNGKey(0)
    kx, kp = jax.random.split(key)

    x = jax.random.normal(kx, (bsz, seq, input_dim), jnp.float32)
    # mask chosen so cumsum stays within the position-embedding table range
    mask = jnp.zeros((bsz, seq), dtype=bool).at[:, :2].set(True)

    params = init_params(kp, input_dim, hidden_dim, 1, conv_filters,
                         num_segments, num_labels)

    out = cnn_predictor_forward(x, mask, params)
    out = jax.block_until_ready(out)
    assert out.shape == (bsz, num_labels)
    assert bool(jnp.all(jnp.isfinite(out)))
    print("KERNEL_OK")
</pallas_src>

<mosaic_0001>
module attributes {stable_mosaic.version = 11 : i64} {
  func.func @_cnn_predictor_kernel(%arg0: memref<2x32x32xf32, #tpu.memory_space<vmem>>, %arg1: memref<416x256xbf16, #tpu.memory_space<vmem>>, %arg2: memref<4x256xf32, #tpu.memory_space<vmem>>, %arg3: memref<2x128xf32, #tpu.memory_space<vmem>>) attributes {dimension_semantics = [], scalar_prefetch = 0 : i64, scratch_operands = 0 : i64, tpu.core_type = #tpu.core_type<tc>} {
    %c0 = arith.constant 0 : index
    %c0_0 = arith.constant 0 : index
    %c0_1 = arith.constant 0 : index
    %0 = vector.load %arg0[%c0, %c0_0, %c0_1] : memref<2x32x32xf32, #tpu.memory_space<vmem>>, vector<1x32x32xf32>
    %1 = vector.shape_cast %0 : vector<1x32x32xf32> to vector<32x32xf32>
    %c1 = arith.constant 1 : index
    %c0_2 = arith.constant 0 : index
    %c0_3 = arith.constant 0 : index
    %2 = vector.load %arg0[%c1, %c0_2, %c0_3] : memref<2x32x32xf32, #tpu.memory_space<vmem>>, vector<1x32x32xf32>
    %3 = vector.shape_cast %2 : vector<1x32x32xf32> to vector<32x32xf32>
    %4 = tpu.iota {dimensions = array<i32: 1>} : vector<32x32xi32>
    %c14_i32 = arith.constant 14 : i32
    %5 = vector.broadcast %c14_i32 : i32 to vector<32x32xi32>
    %6 = arith.cmpi slt, %4, %5 : vector<32x32xi32>
    %cst = arith.constant 0xFF800000 : f32
    %7 = vector.broadcast %cst : f32 to vector<32x32xf32>
    %8 = arith.select %6, %1, %7 : vector<32x32xi1>, vector<32x32xf32>
    %cst_4 = arith.constant dense<0xFF800000> : vector<32xf32>
    %9 = vector.multi_reduction <maximumf>, %8, %cst_4 [1] : vector<32x32xf32> to vector<32xf32>
    %10 = vector.shape_cast %9 : vector<32xf32> to vector<32x1xf32>
    %11 = vector.broadcast %10 : vector<32x1xf32> to vector<32x32xf32>
    %12 = arith.subf %8, %11 : vector<32x32xf32>
    %13 = math.exp %12 : vector<32x32xf32>
    %cst_5 = arith.constant dense<0.000000e+00> : vector<32xf32>
    %14 = vector.multi_reduction <add>, %13, %cst_5 [1] : vector<32x32xf32> to vector<32xf32>
    %15 = vector.shape_cast %14 : vector<32xf32> to vector<32x1xf32>
    %16 = tpu.reciprocal %15 {approx = true} : vector<32x1xf32> -> vector<32x1xf32>
    %17 = vector.broadcast %16 : vector<32x1xf32> to vector<32x32xf32>
    %18 = arith.mulf %13, %17 : vector<32x32xf32>
    %19 = tpu.iota {dimensions = array<i32: 0>} : vector<32x32xi32>
    %c15_i32 = arith.constant 15 : i32
    %20 = vector.broadcast %c15_i32 : i32 to vector<32x32xi32>
    %21 = arith.andi %19, %20 : vector<32x32xi32>
    %c8_i32 = arith.constant 8 : i32
    %22 = vector.broadcast %c8_i32 : i32 to vector<32x32xi32>
    %23 = arith.cmpi slt, %21, %22 : vector<32x32xi32>
    %cst_6 = arith.constant 0.000000e+00 : f32
    %24 = vector.broadcast %cst_6 : f32 to vector<32x32xf32>
    %25 = arith.select %23, %18, %24 : vector<32x32xi1>, vector<32x32xf32>
    %c14_i32_7 = arith.constant 14 : i32
    %26 = tpu.dynamic_rotate %25 by %c14_i32_7 dim 1 : vector<32x32xf32>, i32 -> vector<32x32xf32>
    %27 = arith.addf %1, %26 : vector<32x32xf32>
    %28 = arith.addf %27, %3 : vector<32x32xf32>
    %29 = arith.truncf %28 : vector<32x32xf32> to vector<32x32xbf16>
    %c0_8 = arith.constant 0 : index
    %c0_9 = arith.constant 0 : index
    %30 = vector.load %arg1[%c0_8, %c0_9] : memref<416x256xbf16, #tpu.memory_space<vmem>>, vector<32x256xbf16>
    %cst_10 = arith.constant dense<0.000000e+00> : vector<32x256xf32>
    %31 = tpu.matmul %29, %30, %cst_10 {dimension_numbers = #tpu.dot_dimension_numbers<[1], [0], [0], [1], [0, 0, 1, 1], [], []>} : vector<32x32xbf16>, vector<32x256xbf16>, vector<32x256xf32> -> vector<32x256xf32>
    %c0_11 = arith.constant 0 : index
    %c0_12 = arith.constant 0 : index
    %32 = vector.load %arg2[%c0_11, %c0_12] : memref<4x256xf32, #tpu.memory_space<vmem>>, vector<1x256xf32>
    %33 = vector.broadcast %32 : vector<1x256xf32> to vector<32x256xf32>
    %34 = arith.addf %31, %33 : vector<32x256xf32>
    %35 = vector.extract_strided_slice %34 {offsets = [0, 0], sizes = [32, 128], strides = [1, 1]} : vector<32x256xf32> to vector<32x128xf32>
    %36 = vector.extract_strided_slice %34 {offsets = [0, 128], sizes = [32, 128], strides = [1, 1]} : vector<32x256xf32> to vector<32x128xf32>
    %c64_i32 = arith.constant 64 : i32
    %37 = tpu.dynamic_rotate %36 by %c64_i32 dim 1 : vector<32x128xf32>, i32 -> vector<32x128xf32>
    %c31_i32 = arith.constant 31 : i32
    %38 = tpu.dynamic_rotate %37 by %c31_i32 dim 0 : vector<32x128xf32>, i32 -> vector<32x128xf32>
    %39 = arith.addf %35, %38 : vector<32x128xf32>
    %40 = vector.shape_cast %39 : vector<32x128xf32> to vector<2x16x128xf32>
    %41 = tpu.iota {dimensions = array<i32: 1>} : vector<2x16x128xi32>
    %42 = tpu.iota {dimensions = array<i32: 2>} : vector<2x16x128xi32>
    %c64_i32_13 = arith.constant 64 : i32
    %43 = vector.broadcast %c64_i32_13 : i32 to vector<2x16x128xi32>
    %44 = arith.cmpi slt, %42, %43 : vector<2x16x128xi32>
    %c9_i32 = arith.constant 9 : i32
    %c8_i32_14 = arith.constant 8 : i32
    %45 = vector.broadcast %c9_i32 : i32 to vector<2x16x128xi32>
    %46 = vector.broadcast %c8_i32_14 : i32 to vector<2x16x128xi32>
    %47 = arith.select %44, %45, %46 : vector<2x16x128xi1>, vector<2x16x128xi32>
    %48 = arith.cmpi slt, %41, %47 : vector<2x16x128xi32>
    %cst_15 = arith.constant 0xFF800000 : f32
    %49 = vector.broadcast %cst_15 : f32 to vector<2x16x128xf32>
    %50 = arith.select %48, %40, %49 : vector<2x16x128xi1>, vector<2x16x128xf32>
    %cst_16 = arith.constant dense<0xFF800000> : vector<2x128xf32>
    %51 = vector.multi_reduction <maximumf>, %50, %cst_16 [1] : vector<2x16x128xf32> to vector<2x128xf32>
    %52 = math.tanh %51 : vector<2x128xf32>
    %53 = arith.truncf %52 : vector<2x128xf32> to vector<2x128xbf16>
    %c32 = arith.constant 32 : index
    %c0_17 = arith.constant 0 : index
    %54 = vector.load %arg1[%c32, %c0_17] : memref<416x256xbf16, #tpu.memory_space<vmem>>, vector<128x256xbf16>
    %cst_18 = arith.constant dense<0.000000e+00> : vector<2x256xf32>
    %55 = tpu.matmul %53, %54, %cst_18 {dimension_numbers = #tpu.dot_dimension_numbers<[1], [0], [0], [1], [0, 0, 1, 1], [], []>} : vector<2x128xbf16>, vector<128x256xbf16>, vector<2x256xf32> -> vector<2x256xf32>
    %c1_19 = arith.constant 1 : index
    %c0_20 = arith.constant 0 : index
    %56 = vector.load %arg2[%c1_19, %c0_20] : memref<4x256xf32, #tpu.memory_space<vmem>>, vector<1x256xf32>
    %57 = vector.broadcast %56 : vector<1x256xf32> to vector<2x256xf32>
    %58 = arith.addf %55, %57 : vector<2x256xf32>
    %59 = vector.extract_strided_slice %58 {offsets = [0, 0], sizes = [2, 128], strides = [1, 1]} : vector<2x256xf32> to vector<2x128xf32>
    %60 = arith.negf %59 : vector<2x128xf32>
    %61 = math.exp %60 : vector<2x128xf32>
    %cst_21 = arith.constant 1.000000e+00 : f32
    %62 = vector.broadcast %cst_21 : f32 to vector<2x128xf32>
    %63 = arith.addf %62, %61 : vector<2x128xf32>
    %64 = arith.divf %62, %63 : vector<2x128xf32>
    %65 = arith.mulf %64, %52 : vector<2x128xf32>
    %cst_22 = arith.constant 1.000000e+00 : f32
    %66 = vector.broadcast %cst_22 : f32 to vector<2x128xf32>
    %67 = arith.subf %66, %64 : vector<2x128xf32>
    %68 = vector.extract_strided_slice %58 {offsets = [0, 128], sizes = [2, 128], strides = [1, 1]} : vector<2x256xf32> to vector<2x128xf32>
    %69 = math.tanh %68 : vector<2x128xf32>
    %70 = arith.mulf %67, %69 : vector<2x128xf32>
    %71 = arith.addf %65, %70 : vector<2x128xf32>
    %cst_23 = arith.constant dense<0.000000e+00> : vector<2xf32>
    %72 = vector.multi_reduction <add>, %71, %cst_23 [1] : vector<2x128xf32> to vector<2xf32>
    %73 = vector.shape_cast %72 : vector<2xf32> to vector<2x1xf32>
    %cst_24 = arith.constant 1.280000e+02 : f32
    %74 = vector.broadcast %cst_24 : f32 to vector<2x1xf32>
    %75 = arith.divf %73, %74 : vector<2x1xf32>
    %76 = vector.broadcast %75 : vector<2x1xf32> to vector<2x128xf32>
    %77 = arith.subf %71, %76 : vector<2x128xf32>
    %78 = arith.mulf %77, %77 : vector<2x128xf32>
    %cst_25 = arith.constant dense<0.000000e+00> : vector<2xf32>
    %79 = vector.multi_reduction <add>, %78, %cst_25 [1] : vector<2x128xf32> to vector<2xf32>
    %80 = vector.shape_cast %79 : vector<2xf32> to vector<2x1xf32>
    %cst_26 = arith.constant 1.280000e+02 : f32
    %81 = vector.broadcast %cst_26 : f32 to vector<2x1xf32>
    %82 = arith.divf %80, %81 : vector<2x1xf32>
    %83 = vector.broadcast %75 : vector<2x1xf32> to vector<2x128xf32>
    %84 = arith.subf %71, %83 : vector<2x128xf32>
    %cst_27 = arith.constant 9.99999974E-6 : f32
    %85 = vector.broadcast %cst_27 : f32 to vector<2x1xf32>
    %86 = arith.addf %82, %85 : vector<2x1xf32>
    %87 = math.rsqrt %86 : vector<2x1xf32>
    %88 = vector.broadcast %87 : vector<2x1xf32> to vector<2x128xf32>
    %89 = arith.mulf %84, %88 : vector<2x128xf32>
    %c3 = arith.constant 3 : index
    %c0_28 = arith.constant 0 : index
    %90 = vector.load %arg2[%c3, %c0_28] : memref<4x256xf32, #tpu.memory_space<vmem>>, vector<1x128xf32>
    %91 = vector.broadcast %90 : vector<1x128xf32> to vector<2x128xf32>
    %92 = arith.mulf %89, %91 : vector<2x128xf32>
    %c3_29 = arith.constant 3 : index
    %c128 = arith.constant 128 : index
    %93 = vector.load %arg2[%c3_29, %c128] : memref<4x256xf32, #tpu.memory_space<vmem>>, vector<1x128xf32>
    %94 = vector.broadcast %93 : vector<1x128xf32> to vector<2x128xf32>
    %95 = arith.addf %92, %94 : vector<2x128xf32>
    %96 = arith.truncf %95 : vector<2x128xf32> to vector<2x128xbf16>
    %c160 = arith.constant 160 : index
    %c0_30 = arith.constant 0 : index
    %97 = vector.load %arg1[%c160, %c0_30] : memref<416x256xbf16, #tpu.memory_space<vmem>>, vector<128x128xbf16>
    %cst_31 = arith.constant dense<0.000000e+00> : vector<2x128xf32>
    %98 = tpu.matmul %96, %97, %cst_31 {dimension_numbers = #tpu.dot_dimension_numbers<[1], [0], [0], [1], [0, 0, 1, 1], [], []>} : vector<2x128xbf16>, vector<128x128xbf16>, vector<2x128xf32> -> vector<2x128xf32>
    %c2 = arith.constant 2 : index
    %c0_32 = arith.constant 0 : index
    %99 = vector.load %arg2[%c2, %c0_32] : memref<4x256xf32, #tpu.memory_space<vmem>>, vector<1x128xf32>
    %100 = vector.broadcast %99 : vector<1x128xf32> to vector<2x128xf32>
    %101 = arith.addf %98, %100 : vector<2x128xf32>
    %102 = math.tanh %101 : vector<2x128xf32>
    %103 = arith.truncf %102 : vector<2x128xf32> to vector<2x128xbf16>
    %c288 = arith.constant 288 : index
    %c0_33 = arith.constant 0 : index
    %104 = vector.load %arg1[%c288, %c0_33] : memref<416x256xbf16, #tpu.memory_space<vmem>>, vector<128x128xbf16>
    %cst_34 = arith.constant dense<0.000000e+00> : vector<2x128xf32>
    %105 = tpu.matmul %103, %104, %cst_34 {dimension_numbers = #tpu.dot_dimension_numbers<[1], [0], [0], [1], [0, 0, 1, 1], [], []>} : vector<2x128xbf16>, vector<128x128xbf16>, vector<2x128xf32> -> vector<2x128xf32>
    %c2_35 = arith.constant 2 : index
    %c128_36 = arith.constant 128 : index
    %106 = vector.load %arg2[%c2_35, %c128_36] : memref<4x256xf32, #tpu.memory_space<vmem>>, vector<1x128xf32>
    %107 = vector.broadcast %106 : vector<1x128xf32> to vector<2x128xf32>
    %108 = arith.addf %105, %107 : vector<2x128xf32>
    %c0_37 = arith.constant 0 : index
    %c0_38 = arith.constant 0 : index
    %109 = vector.load %arg3[%c0_37, %c0_38] : memref<2x128xf32, #tpu.memory_space<vmem>>, vector<2x128xf32>
    tpu.vector_store %arg3[%c0_37, %c0_38], %108 {strides = array<i32>} : memref<2x128xf32, #tpu.memory_space<vmem>>, vector<2x128xf32>,
    return
  }
}

</mosaic_0001>

<bundles_post_ra>
// kernel: cnn_predictor_forward.1
= control target key start
LH: loop header
LB: loop body
LE: loop exit
PB: predicated region body
PF: predicated region fallthrough
CT: control target
= control target key end

     0   :  { %v25_v1 = vlaneseq  ;;  %vm32_vm0 = vcmask 261120   ;;  %s1182_s0 = inlined_call_operand.vmem [shape: f32[2,32,32], index: 0, kind: input, shape index: {}]   ;;  %s1183_s1 = inlined_call_operand.vmem [shape: bf16[416,256], index: 1, kind: input, shape index: {}]   ;;  %s1184_s2 = inlined_call_operand.vmem [shape: f32[4,256], index: 2, kind: input, shape index: {}]   ;;  %s1185_s3 = inlined_call_operand.hbm [shape: f32[2,128], index: 3, kind: output, shape index: {}]  }
   0x1   :  { %v958_v0 = vld [vmem:[%s1182_s0] sm:$0xff]  ;;  %v963_v2 = vld [vmem:[%s1182_s0 + $0x10] sm:$0xff] }
   0x2   :  { %v966_v3 = vand.u32 127, %v25_v1 }
   0x4   :  { %vm27_vm1 = vcmp.lt.s32.totalorder %v966_v3, 14 }
   0x5   :  { %v28_v4 = vsel %vm27_vm1, %v958_v0, -inf  ;;  %v30_v5 = vsel %vm27_vm1, %v963_v2, -inf }
   0x6   :  { %v33_v6 = vsel %vm32_vm0, %v28_v4, -inf  ;;  %v39_v7 = vsel %vm32_vm0, %v30_v5, -inf }
   0x7   :  { %34 = vmax.xlane.f32.xlu0 %v33_v6 }
   0xb   :  { %40 = vmax.xlane.f32.xlu0 %v39_v7 }
   0xc   :  { %8 = vsyncpa [#allocation3], 0  ;;  %v927_v18 = vmov 0.0   ;;  %s928_s16 = smov 32   ;;  %vm94_vm2 = vcmask 1047808   ;;  %s929_s21 = smov 110  }
   0xd   :  { %v837_v27 = vld [vmem:[%s1183_s1 + $0x14] ss:$8 sps:$4 sm:$0xff]   ;;  %v839_v28 = vld [vmem:[%s1183_s1 + $0x10] ss:$8 sps:$4 sm:$0xff]   ;;  %v840_v37 = vld [vmem:[%s1183_s1 + $0x4] ss:$8 sps:$4 sm:$0xff]  }
   0xe   :  { %199 = vmatprep.subr.bf16.mxu0 %v837_v27  ;;  %v842_v38 = vld [vmem:[%s1183_s1] ss:$8 sps:$4 sm:$0xff]   ;;  %v930_v39 = vmov 0   ;;  %v19_v57 = vld [vmem:[%s1182_s0 + $0x18] sm:$0xff]  ;;  %v725_v59 = vld [vmem:[%s1182_s0 + $0x30] sm:$0xff]  ;;  %vm261_vm3 = vcmp.lt.s32.totalorder %v966_v3, 64 }
   0xf   :  { %200 = vmatpush1.bf16.msra.mxu0 %v839_v28  ;;  %219 = vmatprep.mubr.bf16.mxu0 %v930_v39  ;;  %v17_v46 = vld [vmem:[%s1182_s0 + $0x8] sm:$0xff]  ;;  %v723_v50 = vld [vmem:[%s1182_s0 + $0x20] sm:$0xff]  ;;  %v726_v60 = vld [vmem:[%s1182_s0 + $0x38] sm:$0xff]  ;;  %vm320_vm6 = vcmask 1041409   ;;  %vm460_vm7 = vcmask 1041408   ;;  %vm933_vm8 = vmmov 0  }
  0x10   :  { %201 = vmatprep.subr.bf16.mxu0 %v840_v37  ;;  %436 = vmatprep.mubr.bf16.mxu1 %v930_v39  ;;  %v724_v49 = vld [vmem:[%s1182_s0 + $0x28] sm:$0xff]  ;;  %v149_v6 = vld [vmem:[%s1184_s2] ss:$4 sm:$0x3]  ;;  %s931_s0 = smov 64   ;;  %s934_s4 = smov [#allocation2]  }
  0x11   :  { %v854_v27 = vld [vmem:[%s1183_s1 + $0x60] ss:$8 sps:$4 sm:$0xff]   ;;  %v855_v28 = vld [vmem:[%s1183_s1 + $0x54] ss:$8 sps:$4 sm:$0xff]  }
  0x13   :  { %202 = vmatpush1.bf16.msra.mxu0 %v842_v38 }
  0x14   :  { %789 = vmatprep.subr.bf16.mxu0 %v927_v18 }
  0x90   :  { %v35_v8 = vpop.xlane.xlu0 %34 }
  0x91   :  { %v45_v9 = vsub.f32 %v28_v4, %v35_v8 }
  0x93   :  { %v49_v10 = vmul.f32 1.442695, %v45_v9 }
  0x94   :  { %v41_v11 = vpop.xlane.xlu0 %40 }
  0x95   :  { %883 = vpow2.f32 %v49_v10  ;;  %v47_v12 = vsub.f32 %v30_v5, %v41_v11 }
  0x97   :  { %v53_v13 = vmul.f32 1.442695, %v47_v12 }
  0x99   :  { %885 = vpow2.f32 %v53_v13 }
  0xa2   :  { %v884_v14 = vpop.eup %883 }
  0xa3   :  { %v57_v15 = vsel %vm32_vm0, %v884_v14, 0.0 }
  0xa4   :  { %58 = vadd.xlane.f32.xlu1 %v57_v15 }
  0xa6   :  { %v886_v16 = vpop.eup %885 }
  0xa7   :  { %v63_v17 = vsel %vm32_vm0, %v886_v16, 0.0 }
  0xa8   :  { %64 = vadd.xlane.f32.xlu1 %v63_v17 }
  0xb9   :  { %98 = vrot.lane.b32.xlu1 %v927_v18, %s928_s16 }
 0x12d   :  { %v59_v19 = vpop.xlane.xlu1 %58 }
 0x12e   :  { %887 = vrcp.f32 %v59_v19  ;;  %v845_v19 = vld [vmem:[%s1183_s1 + $0x90] ss:$8 sps:$4 sm:$0xff]  }
 0x131   :  { %v65_v20 = vpop.xlane.xlu1 %64 }
 0x132   :  { %889 = vrcp.f32 %v65_v20 }
 0x135   :  { %v99_v25 = vpop.permute.xlu1 %98 }
 0x136   :  { %v100_v26 = vsel %vm94_vm2, %v99_v25, 0.0  ;;  %v851_v25 = vld [vmem:[%s1183_s1 + $0x70] ss:$8 sps:$4 sm:$0xff]  }
 0x13b   :  { %v888_v21 = vpop.eup %887 }
 0x13c   :  { %v73_v22 = vmul.f32 %v888_v21, %v884_v14 }
 0x13e   :  { %95 = vrot.lane.b32.xlu0 %v73_v22, %s928_s16 }
 0x13f   :  { %v890_v23 = vpop.eup %889 }
 0x140   :  { %v75_v24 = vmul.f32 %v890_v23, %v886_v16  ;;  %v843_v16 = vld [vmem:[%s1183_s1 + $0x94] ss:$8 sps:$4 sm:$0xff]   ;;  %v848_v23 = vld [vmem:[%s1183_s1 + $0x80] ss:$8 sps:$4 sm:$0xff]  }
 0x141   :  { %404 = vmatprep.subr.bf16.mxu1 %v843_v16 }
 0x142   :  { %101 = vrot.lane.b32.xlu1 %v75_v24, %s928_s16  ;;  %405 = vmatpush1.bf16.msra.mxu1 %v845_v19 }
 0x146   :  { %104 = vrot.lane.b32.xlu1 %v927_v18, %s928_s16 }
 0x14a   :  { %109 = vrot.lane.b32.xlu1 %v100_v26, %s928_s16  ;;  %v852_v26 = vld [vmem:[%s1183_s1 + $0x64] ss:$8 sps:$4 sm:$0xff]  }
 0x1b0   :  { %v96_v29 = vpop.permute.xlu0 %95 }
 0x1b1   :  { %v97_v30 = vsel %vm94_vm2, %v96_v29, %v73_v22  ;;  %v857_v29 = vld [vmem:[%s1183_s1 + $0x50] ss:$8 sps:$4 sm:$0xff]  }
 0x1b2   :  { %107 = vrot.lane.b32.xlu0 %v97_v30, %s928_s16  ;;  %v858_v30 = vld [vmem:[%s1183_s1 + $0x44] ss:$8 sps:$4 sm:$0xff]  }
 0x1b4   :  { %v102_v31 = vpop.permute.xlu1 %101 }
 0x1b5   :  { %v103_v32 = vsel %vm94_vm2, %v102_v31, %v75_v24  ;;  %v860_v31 = vld [vmem:[%s1183_s1 + $0x40] ss:$8 sps:$4 sm:$0xff]  }
 0x1b6   :  { %111 = vrot.lane.b32.xlu0 %v103_v32, %s928_s16  ;;  %v861_v32 = vld [vmem:[%s1183_s1 + $0x34] ss:$8 sps:$4 sm:$0xff]  }
 0x1b8   :  { %v105_v33 = vpop.permute.xlu1 %104 }
 0x1b9   :  { %v106_v34 = vsel %vm94_vm2, %v105_v33, 0.0  ;;  %v863_v33 = vld [vmem:[%s1183_s1 + $0x30] ss:$8 sps:$4 sm:$0xff]  }
 0x1ba   :  { %113 = vrot.lane.b32.xlu1 %v106_v34, %s928_s16  ;;  %v864_v34 = vld [vmem:[%s1183_s1 + $0x24] ss:$8 sps:$4 sm:$0xff]  }
 0x1bc   :  { %v110_v35 = vpop.permute.xlu1 %109 }
 0x1bd   :  { %v116_v36 = vsel %vm94_vm2, %v110_v35, 0.0  ;;  %v866_v35 = vld [vmem:[%s1183_s1 + $0x20] ss:$8 sps:$4 sm:$0xff]  }
 0x1be   :  { %125 = vrot.lane.b32.xlu1 %v116_v36, %s929_s21 }
 0x224   :  { %v108_v40 = vpop.permute.xlu0 %107 }
 0x225   :  { %v115_v41 = vsel %vm94_vm2, %v108_v40, %v73_v22  ;;  %v846_v22 = vld [vmem:[%s1183_s1 + $0x84] ss:$8 sps:$4 sm:$0xff]  }
 0x226   :  { %123 = vrot.lane.b32.xlu0 %v115_v41, %s929_s21  ;;  %406 = vmatprep.subr.bf16.mxu1 %v846_v22 }
 0x227   :  { %407 = vmatpush1.bf16.msra.mxu1 %v848_v23 }
 0x228   :  { %v112_v42 = vpop.permute.xlu0 %111 }
 0x229   :  { %v117_v43 = vsel %vm94_vm2, %v112_v42, %v75_v24  ;;  %v849_v24 = vld [vmem:[%s1183_s1 + $0x74] ss:$8 sps:$4 sm:$0xff]   ;;  %v932_v42 = vmov 8  }
 0x22a   :  { %127 = vrot.lane.b32.xlu0 %v117_v43, %s929_s21  ;;  %408 = vmatprep.subr.bf16.mxu1 %v849_v24  ;;  %v262_v43 = vsel %vm261_vm3, 9, %v932_v42 }
 0x22b   :  { %409 = vmatpush1.bf16.msra.mxu1 %v851_v25  ;;  %v733_v25 = vld [vmem:[%s1184_s2 + $0x1] ss:$4 sm:$0x3] }
 0x22c   :  { %v114_v44 = vpop.permute.xlu1 %113  ;;  %410 = vmatprep.subr.bf16.mxu1 %v852_v26 }
 0x22d   :  { %v118_v45 = vsel %vm94_vm2, %v114_v44, 0.0 }
 0x22e   :  { %129 = vrot.lane.b32.xlu1 %v118_v45, %s929_s21 }
 0x22f   :  { %411 = vmatpush1.bf16.msra.mxu1 %v854_v27 }
 0x230   :  { %v126_v47 = vpop.permute.xlu1 %125  ;;  %412 = vmatprep.subr.bf16.mxu1 %v855_v28 }
 0x231   :  { %v136_v48 = vadd.f32 %v126_v47, %v17_v46 }
 0x233   :  { %v140_v52 = vadd.f32 %v724_v49, %v136_v48  ;;  %413 = vmatpush1.bf16.msra.mxu1 %v857_v29 }
 0x234   :  { %414 = vmatprep.subr.bf16.mxu1 %v858_v30 }
 0x237   :  { %415 = vmatpush1.bf16.msra.mxu1 %v860_v31 }
 0x238   :  { %416 = vmatprep.subr.bf16.mxu1 %v861_v32 }
 0x23b   :  { %417 = vmatpush1.bf16.msra.mxu1 %v863_v33 }
 0x23c   :  { %418 = vmatprep.subr.bf16.mxu1 %v864_v34 }
 0x23f   :  { %419 = vmatpush1.bf16.msra.mxu1 %v866_v35 }
 0x240   :  { %809 = vmatprep.subr.bf16.mxu1 %v927_v18 }
 0x298   :  { %v124_v51 = vpop.permute.xlu0 %123 }
 0x299   :  { %v135_v53 = vadd.f32 %v124_v51, %v958_v0 }
 0x29b   :  { %v139_v54 = vadd.f32 %v723_v50, %v135_v53 }
 0x29c   :  { %v128_v55 = vpop.permute.xlu0 %127 }
 0x29d   :  { %v143_v56 = vpack.c.bf16 %v140_v52, %v139_v54  ;;  %v137_v58 = vadd.f32 %v128_v55, %v963_v2  ;;  %v1021_v2 = vshrl.u32 %v25_v1, 7 }
 0x29f   :  { %731 = vmatmul.mubr.msk.bf16.vlgmr.msra.gmra.mxu0 %vm32_vm0, %v143_v56  ;;  %v141_v63 = vadd.f32 %v725_v59, %v137_v58  ;;  %v157_v5 = vsub.s32 1, %v1021_v2  ;;  %v153_v36 = vsub.s32 0, %v1021_v2  ;;  %v79_v40 = vadd.s32 8, %v1021_v2 }
 0x2a0   :  { %v130_v61 = vpop.permute.xlu1 %129  ;;  %229 = vmatprep.mubr.bf16.mxu0 %v930_v39  ;;  %vm252_vm4 = vcmp.lt.s32.totalorder %v1021_v2, 7  ;;  %v868_v2 = vld [vmem:[%s1183_s1 + $0x100] ss:$8 sps:$4 sm:$0xff]  }
 0x2a1   :  { %v138_v62 = vadd.f32 %v130_v61, %v19_v57  ;;  %v158_v7 = vrot.slane %v149_v6, %v157_v5  ;;  %v154_v41 = vrot.slane %v149_v6, %v153_v36  ;;  %vm264_vm5 = vcmp.lt.s32.totalorder %v79_v40, %v262_v43 }
 0x2a2   :  { %v309_v26 = vrot.slane %v733_v25, %v153_v36  ;;  %v313_v33 = vrot.slane %v733_v25, %v157_v5 }
 0x2a3   :  { %v142_v0 = vadd.f32 %v726_v60, %v138_v62 }
 0x2a5   :  { %v144_v4 = vpack.c.bf16 %v142_v0, %v141_v63 }
 0x2a7   :  { %732 = vmatmul.mubr.msk.bf16.gmra.mxu0 %vm32_vm0, %v144_v4 }
 0x2a8   :  { %805 = vmatprep.mubr.msk.bf16.mxu0 %vm933_vm8, %v927_v18 }
 0x35f   :  { %v1029_v8 = vpop.f32.mrf.mxu0 }
 0x360   :  { %v222_v49 = vadd.f32 %v1029_v8, %v154_v41 }
 0x361   :  { %v223_v9 = vpop.f32.mrf.mxu0 }
 0x362   :  { %v224_v10 = vadd.f32 %v223_v9, %v158_v7 }
 0x363   :  { %v225_v11 = vpop.f32.mrf.mxu0 }
 0x364   :  { %240 = vrot.lane.b32.xlu0 %v224_v10, %s931_s0  ;;  %v226_v47 = vadd.f32 %v225_v11, %v154_v41 }
 0x365   :  { %v227_v12 = vpop.f32.mrf.mxu0 }
 0x366   :  { %v228_v13 = vadd.f32 %v227_v12, %v158_v7 }
 0x367   :  { %v1031_v1 = vpop.f32.mrf.mxu0 }
 0x368   :  { %242 = vrot.lane.b32.xlu1 %v228_v13, %s931_s0  ;;  %v232_v54 = vadd.f32 %v1031_v1, %v154_v41 }
 0x369   :  { %v233_v14 = vpop.f32.mrf.mxu0 }
 0x36a   :  { %v234_v15 = vadd.f32 %v233_v14, %v158_v7 }
 0x36b   :  { %v235_v17 = vpop.f32.mrf.mxu0 }
 0x36c   :  { %244 = vrot.lane.b32.xlu0 %v234_v15, %s931_s0  ;;  %v236_v55 = vadd.f32 %v235_v17, %v154_v41 }
 0x36d   :  { %v237_v20 = vpop.f32.mrf.mxu0 }
 0x36e   :  { %v238_v21 = vadd.f32 %v237_v20, %v158_v7 }
 0x370   :  { %246 = vrot.lane.b32.xlu1 %v238_v21, %s931_s0 }
 0x3d6   :  { %v241_v37 = vpop.permute.xlu0 %240 }
 0x3d7   :  { %v248_v44 = vrot.slane %v241_v37, 1 }
 0x3da   :  { %v243_v38 = vpop.permute.xlu1 %242 }
 0x3db   :  { %v249_v39 = vrot.slane %v243_v38, 1 }
 0x3dd   :  { %v255_v48 = vsel %vm252_vm4, %v248_v44, %v249_v39 }
 0x3de   :  { %v245_v45 = vpop.permute.xlu0 %244  ;;  %v257_v52 = vadd.f32 %v255_v48, %v222_v49  ;;  %v869_v49 = vld [vmem:[%s1183_s1 + $0xf0] ss:$8 sps:$4 sm:$0xff]  }
 0x3df   :  { %v250_v46 = vrot.slane %v245_v45, 1 }
 0x3e1   :  { %v254_v3 = vsel %vm252_vm4, %v249_v39, %v250_v46 }
 0x3e2   :  { %v258_v50 = vadd.f32 %v254_v3, %v226_v47  ;;  %v247_v51 = vpop.permute.xlu1 %246  ;;  %v870_v3 = vld [vmem:[%s1183_s1 + $0xe0] ss:$8 sps:$4 sm:$0xff]  }
 0x3e3   :  { %v251_v53 = vrot.slane %v247_v51, 1  ;;  %v872_v51 = vld [vmem:[%s1183_s1 + $0xc0] ss:$8 sps:$4 sm:$0xff]  }
 0x3e4   :  { %v266_v56 = vsel %vm264_vm5, %v258_v50, -inf  ;;  %v871_v50 = vld [vmem:[%s1183_s1 + $0xd0] ss:$8 sps:$4 sm:$0xff]  }
 0x3e5   :  { %v269_v57 = vmax.f32 %v257_v52, %v266_v56  ;;  %v253_v58 = vsel %vm252_vm4, %v250_v46, %v251_v53  ;;  %v256_v59 = vsel %vm252_vm4, %v251_v53, %v248_v44  ;;  %v867_v44 = vld [vmem:[%s1183_s1 + $0x110] ss:$8 sps:$4 sm:$0xff]   ;;  %v874_v53 = vld [vmem:[%s1183_s1 + $0xa0] ss:$8 sps:$4 sm:$0xff]  }
 0x3e6   :  { %v259_v60 = vadd.f32 %v253_v58, %v232_v54  ;;  %v260_v61 = vadd.f32 %v256_v59, %v236_v55  ;;  %790 = vmatpush3.bf16.msra.mxu0 %v867_v44  ;;  %v873_v52 = vld [vmem:[%s1183_s1 + $0xb0] ss:$8 sps:$4 sm:$0xff]   ;;  %v876_v55 = vld [vmem:[%s1183_s1 + $0x180] ss:$8 sps:$4 sm:$0xff]  }
 0x3e7   :  { %v270_v62 = vrot.slane %v269_v57, 4  ;;  %791 = vmatprep.subr.bf16.mxu0 %v927_v18  ;;  %v875_v54 = vld [vmem:[%s1183_s1 + $0x190] ss:$8 sps:$4 sm:$0xff]  }
 0x3e8   :  { %v268_v63 = vsel %vm264_vm5, %v260_v61, -inf  ;;  %v877_v56 = vld [vmem:[%s1183_s1 + $0x170] ss:$8 sps:$4 sm:$0xff]   ;;  %v751_v61 = vld [vmem:[%s1184_s2 + $0x3] ss:$0 sm:$0xff] }
 0x3e9   :  { %v271_v0 = vmax.f32 %v269_v57, %v270_v62  ;;  %v276_v4 = vmax.f32 %v259_v60, %v268_v63  ;;  %v752_v63 = vld [vmem:[%s1184_s2 + $0x7] ss:$0 sm:$0xff] }
 0x3ea   :  { %792 = vmatpush3.bf16.msra.mxu0 %v868_v2 }
 0x3eb   :  { %v272_v6 = vrot.slane %v271_v0, 2  ;;  %v277_v7 = vrot.slane %v276_v4, 4  ;;  %793 = vmatprep.subr.bf16.mxu0 %v927_v18 }
 0x3ed   :  { %v273_v8 = vmax.f32 %v271_v0, %v272_v6  ;;  %v278_v9 = vmax.f32 %v276_v4, %v277_v7  ;;  %v878_v7 = vld [vmem:[%s1183_s1 + $0x160] ss:$8 sps:$4 sm:$0xff]  }
 0x3ee   :  { %794 = vmatpush3.bf16.msra.mxu0 %v869_v49 }
 0x3ef   :  { %v274_v10 = vrot.slane %v273_v8, 1  ;;  %v279_v11 = vrot.slane %v278_v9, 2  ;;  %795 = vmatprep.subr.bf16.mxu0 %v927_v18 }
 0x3f1   :  { %v275_v12 = vmax.f32 %v273_v8, %v274_v10  ;;  %v280_v13 = vmax.f32 %v278_v9, %v279_v11  ;;  %v879_v8 = vld [vmem:[%s1183_s1 + $0x150] ss:$8 sps:$4 sm:$0xff]   ;;  %v880_v9 = vld [vmem:[%s1183_s1 + $0x140] ss:$8 sps:$4 sm:$0xff]  }
 0x3f2   :  { %796 = vmatpush3.bf16.msra.mxu0 %v870_v3  ;;  %v881_v10 = vld [vmem:[%s1183_s1 + $0x130] ss:$8 sps:$4 sm:$0xff]   ;;  %v882_v11 = vld [vmem:[%s1183_s1 + $0x120] ss:$8 sps:$4 sm:$0xff]   ;;  %s715_s1 = sshll.u32 %s934_s4, 4  ;;  %s716_s1 = int_to_ptr.vmem [resolvable:$true] %s715_s1 }
 0x3f3   :  { %891 = vtanh.f32 %v275_v12  ;;  %v281_v1 = vrot.slane %v280_v13, 1  ;;  %797 = vmatprep.subr.bf16.mxu0 %v927_v18  ;;  %v753_v12 = vld [vmem:[%s1184_s2 + $0x2] ss:$0 sm:$0xff]  ;;  %s905_s5 = scalar_lea.vmem %s716_s1, 32  ;;  %p910_p1 = scmp.lt.s32.totalorder %s716_s1, %s716_s1 }
 0x3f4   :  { %p906_p0 = scmp.ne.s32.totalorder %s716_s1, %s905_s5  ;;  %p911_p2 = scmp.lt.s32.totalorder %s905_s5, %s905_s5 }
 0x3f5   :  { %v282_v14 = vmax.f32 %v280_v13, %v281_v1 }
 0x3f6   :  { %798 = vmatpush3.bf16.msra.mxu0 %v871_v50  ;;  %p912_p3 = por %p911_p2, %p910_p1 }
 0x3f7   :  { %893 = vtanh.f32 %v282_v14  ;;  %799 = vmatprep.subr.bf16.mxu0 %v927_v18 }
 0x3f8   :  { %p913_p4 = pnand %p912_p3, %p906_p0 }
 0x3fa   :  { %800 = vmatpush3.bf16.msra.mxu0 %v872_v51 }
 0x3fb   :  { %801 = vmatprep.subr.bf16.mxu0 %v927_v18 }
 0x3fe   :  { %802 = vmatpush3.bf16.msra.mxu0 %v873_v52 }
 0x3ff   :  { %803 = vmatprep.subr.bf16.mxu0 %v927_v18 }
 0x400   :  { %v892_v15 = vpop.eup %891 }
 0x401   :  { %v285_v16 = vpack.c.bf16 %v892_v15, %v892_v15 }
 0x402   :  { %804 = vmatpush3.bf16.msra.mxu0 %v874_v53 }
 0x403   :  { %v318_v21 = vunpack.c.l.b16 %v285_v16 }
 0x404   :  { %v894_v17 = vpop.eup %893 }
 0x405   :  { %v286_v19 = vpack.c.bf16 %v894_v17, %v894_v17  ;;  %v453_v20 = vsel %vm320_vm6, %v894_v17, %v892_v15 }
 0x407   :  { %v319_v22 = vunpack.c.l.b16 %v286_v19 }
 0x409   :  { %v321_v23 = vsel %vm320_vm6, %v319_v22, %v318_v21 }
 0x40a   :  { %v322_v24 = vpack.c.b16 %v321_v23, %v321_v23 }
 0x40c   :  { %437 = vmatmul.mubr.bf16.vlgmr.msra.gmra.mxu1 %v322_v24 }
 0x40d   :  { %825 = vmatprep.mubr.msk.bf16.mxu1 %vm933_vm8, %v927_v18  ;;  %810 = vmatpush3.bf16.msra.mxu1 %v875_v54 }
 0x40e   :  { %811 = vmatprep.subr.bf16.mxu1 %v927_v18 }
 0x411   :  { %812 = vmatpush3.bf16.msra.mxu1 %v876_v55 }
 0x412   :  { %813 = vmatprep.subr.bf16.mxu1 %v927_v18 }
 0x415   :  { %814 = vmatpush3.bf16.msra.mxu1 %v877_v56 }
 0x416   :  { %815 = vmatprep.subr.bf16.mxu1 %v927_v18 }
 0x419   :  { %816 = vmatpush3.bf16.msra.mxu1 %v878_v7 }
 0x41a   :  { %817 = vmatprep.subr.bf16.mxu1 %v927_v18 }
 0x41d   :  { %818 = vmatpush3.bf16.msra.mxu1 %v879_v8 }
 0x41e   :  { %819 = vmatprep.subr.bf16.mxu1 %v927_v18 }
 0x421   :  { %820 = vmatpush3.bf16.msra.mxu1 %v880_v9 }
 0x422   :  { %821 = vmatprep.subr.bf16.mxu1 %v927_v18 }
 0x425   :  { %822 = vmatpush3.bf16.msra.mxu1 %v881_v10 }
 0x426   :  { %823 = vmatprep.subr.bf16.mxu1 %v927_v18  ;;  %v762_v18 = vld [vmem:[%s1184_s2 + $0x6] ss:$0 sm:$0xff] }
 0x429   :  { %824 = vmatpush3.bf16.msra.mxu1 %v882_v11 }
 0x4cc   :  { %v438_v27 = vpop.f32.mrf.mxu1 }
 0x4cd   :  { %v439_v28 = vadd.f32 %v438_v27, %v309_v26 }
 0x4ce   :  { %v440_v29 = vpop.f32.mrf.mxu1 }
 0x4cf   :  { %v750_v30 = vmul.f32 -1.442695, %v439_v28  ;;  %v441_v37 = vadd.f32 %v440_v29, %v313_v33 }
 0x4d0   :  { %v442_v31 = vpop.f32.mrf.mxu1 }
 0x4d1   :  { %895 = vpow2.f32 %v750_v30 }
 0x4d2   :  { %v443_v32 = vpop.f32.mrf.mxu1 }
 0x4de   :  { %v896_v34 = vpop.eup %895 }
 0x4df   :  { %v448_v35 = vadd.f32 1.0, %v896_v34 }
 0x4e1   :  { %897 = vrcp.f32 %v448_v35 }
 0x4e2   :  { %899 = vtanh.f32 %v441_v37 }
 0x4ee   :  { %v898_v38 = vpop.eup %897 }
 0x4ef   :  { %v456_v39 = vsub.f32 1.0, %v898_v38  ;;  %v900_v40 = vpop.eup %899  ;;  %v455_v41 = vmul.f32 %v898_v38, %v453_v20 }
 0x4f1   :  { %v458_v36 = vmul.f32 %v900_v40, %v456_v39 }
 0x4f3   :  { %v459_v42 = vadd.f32 %v458_v36, %v455_v41 }
 0x4f5   :  { %v461_v43 = vsel %vm460_vm7, %v459_v42, 0.0 }
 0x4f6   :  { %462 = vadd.xlane.f32.xlu0 %v461_v43 }
 0x57f   :  { %v463_v5 = vpop.xlane.xlu0 %462 }
 0x580   :  { %v465_v45 = vmul.f32 0.0078125, %v463_v5 }
 0x582   :  { %v466_v46 = vsub.f32 %v459_v42, %v465_v45 }
 0x584   :  { %v467_v47 = vmul.f32 %v466_v46, %v466_v46 }
 0x586   :  { %v468_v48 = vsel %vm460_vm7, %v467_v47, 0.0 }
 0x587   :  { %469 = vadd.xlane.f32.xlu1 %v468_v48 }
 0x610   :  { %v470_v57 = vpop.xlane.xlu1 %469 }
 0x611   :  { %v471_v58 = vmul.f32 0.0078125, %v470_v57 }
 0x613   :  { %v472_v59 = vadd.f32 1e-05, %v471_v58 }
 0x615   :  { %901 = vrsqrt.f32 %v472_v59 }
 0x622   :  { %v902_v60 = vpop.eup %901 }
 0x623   :  { %v474_v62 = vmul.f32 %v902_v60, %v466_v46 }
 0x625   :  { %v480_v0 = vmul.f32 %v751_v61, %v474_v62 }
 0x627   :  { %v486_v4 = vadd.f32 %v752_v63, %v480_v0 }
 0x629   :  { %v487_v6 = vpack.c.bf16 %v486_v4, %v486_v4 }
 0x62b   :  { %806 = vmatmul.mubr.bf16.vlgmr.msra.gmra.mxu0 %v487_v6 }
 0x6eb   :  { %v591_v13 = vpop.f32.mrf.mxu0 }
 0x6ec   :  { %v592_v1 = vadd.f32 %v753_v12, %v591_v13 }
 0x6ed   :  { %v807_v14 = vpop.f32.mrf.mxu0 }
 0x6ee   :  { %903 = vtanh.f32 %v592_v1 }
 0x6ef   :  { %v594_v15 = vpop.f32.mrf.mxu0 }
 0x6f1   :  { %v808_v16 = vpop.f32.mrf.mxu0 }
 0x6fb   :  { %v904_v17 = vpop.eup %903 }
 0x6fc   :  { %v598_v19 = vpack.c.bf16 %v904_v17, %v904_v17 }
 0x6fe   :  { %826 = vmatmul.mubr.bf16.vlgmr.msra.gmra.mxu1 %v598_v19 }
 0x7be   :  { %v702_v20 = vpop.f32.mrf.mxu1 }
 0x7bf   :  { %v703_v21 = vadd.f32 %v762_v18, %v702_v20 }
 0x7c0   :  { %v827_v22 = vpop.f32.mrf.mxu1 }
 0x7c1   :  { %708 = vst [vmem:[#allocation2] sm:$0x3] %v703_v21 }
 0x7c2   :  { %v705_v23 = vpop.f32.mrf.mxu1 }
 0x7c3   :  { %916 = shalt.err (!%p913_p4)
}
 0x7c4   :  { %718 = dma.vmem_to_hbm [thread:$0]  %s716_s1, 32, %s1185_s3, [#allocation3]   ;;  %v828_v24 = vpop.f32.mrf.mxu1 }
 0x7c5   :  { %925 = dma.done.wait [#allocation3], 32  }
 0x7c6   :  { %926 = vsyncadd [#allocation3], 4294967264 }
 0x7c7   :  { %722 = vsyncpa [#allocation3], 1 }

</bundles_post_ra>
